<compile_context>
chip_gen: v7x
topology: tpu7x:2x2x1
jax: 0.10.0
libtpu: 0.0.40
codegen_flags: <defaults>
</compile_context>

<pallas_src>
import functools

import numpy as np
import jax
import jax.numpy as jnp
from jax.experimental import pallas as pl
from jax.experimental.pallas import tpu as pltpu


# ----------------------------------------------------------------------------
# Host-side static matrices (pure functions of (H, W, bin)) -- setup glue.
# ----------------------------------------------------------------------------
def _adaptive_pool_matrix(H, W, b):
    """M[i*b+j, h*W+w] = PyTorch AdaptiveAvgPool2d(b) averaging weight."""
    def axis_mat(size):
        m = np.zeros((b, size), dtype=np.float32)
        for i in range(b):
            s = (i * size) // b
            e = -(-((i + 1) * size) // b)          # ceil
            m[i, s:e] = 1.0 / (e - s)
        return m

    ah, aw = axis_mat(H), axis_mat(W)              # [b, H], [b, W]
    return (ah[:, None, :, None] * aw[None, :, None, :]).reshape(b * b, H * W)


def _bilinear_up_matrix_T(H, W, b):
    """M[i*b+j, h*W+w] = bilinear weight (align_corners=True), transposed."""
    def axis_mat(out_size):
        m = np.zeros((out_size, b), dtype=np.float32)
        if b == 1 or out_size == 1:
            # align_corners=True with a singleton axis maps every output to
            # source index 0 (PyTorch's area_pixel_compute_scale convention).
            m[:, 0] = 1.0
            return m
        scale = (b - 1) / (out_size - 1)
        for o in range(out_size):
            src = o * scale
            i0 = min(int(np.floor(src)), b - 2)
            frac = src - i0
            m[o, i0] += 1.0 - frac
            m[o, i0 + 1] += frac
        return m

    bh, bw = axis_mat(H), axis_mat(W)              # [H, b], [W, b]
    m = (bh[:, None, :, None] * bw[None, :, None, :]).reshape(H * W, b * b)
    return np.ascontiguousarray(m.T)               # [b*b, H*W]


def _vmem_limit_bytes():
    """Per-generation scoped-VMEM budget (<=48 MiB on v7x, <=96 MiB otherwise)."""
    cap = None
    try:
        cap = getattr(pltpu.get_tpu_info(), "vmem_capacity_bytes", None)
    except Exception:
        cap = None
    if not cap:
        cap = 64 * 1024 * 1024                     # conservative (v7x-sized)
    return int(min(cap * 3 // 4, 96 * 1024 * 1024))


def _pick_hw_tile(hw, bytes_per_col, budget, max_tile=2048):
    """Largest multiple-of-128 divisor of hw whose streamed VMEM fits budget."""
    best = None
    t = 128
    while t <= min(hw, max_tile):
        if hw % t == 0 and t * bytes_per_col <= max(budget, t * bytes_per_col):
            if t * bytes_per_col <= budget:
                best = t
        t += 128
    if best is not None:
        return best
    return 128 if hw % 128 == 0 else hw


# ----------------------------------------------------------------------------
# Phase 1: adaptive avg-pool for ALL bins (HW-tiled reduction).
# ----------------------------------------------------------------------------
def _pool_kernel(x_ref, mpoolT_ref, pooled_ref, *, compute_dtype):
    # x_ref:      [C, hw_tile]   native dtype; cast to bf16 in-kernel (no
    #                            host-side astype pass over x).
    # mpoolT_ref: [hw_tile, BB]  bf16  pooling weights of all bins (transposed)
    # pooled_ref: [C, BB]        f32   resident accumulator (output block)
    k = pl.program_id(2)

    @pl.when(k == 0)
    def _init():
        pooled_ref[...] = jnp.zeros_like(pooled_ref)

    pooled_ref[...] += jnp.dot(x_ref[...].astype(compute_dtype),
                               mpoolT_ref[...],
                               preferred_element_type=jnp.float32)


# ----------------------------------------------------------------------------
# Phase 2: block-diagonal bilinear upsample + in-kernel concat with x.
# ----------------------------------------------------------------------------
def _concat_up_kernel(x_ref, y_ref, mupT_ref, out_ref, *, c):
    # x_ref:   [C, hw_tile]     native dtype, passed straight through
    # y_ref:   [RT, BB]         bf16   block-diagonal (BN + ReLU'd) features
    # mupT_ref:[BB, hw_tile]    bf16   bilinear upsample weights of all bins
    # out_ref: [C+RT, hw_tile]         lane-dense output slab of image n
    out_ref[:c, :] = x_ref[...].astype(out_ref.dtype)
    up = jnp.dot(y_ref[...], mupT_ref[...], preferred_element_type=jnp.float32)
    out_ref[c:, :] = up.astype(out_ref.dtype)


# ----------------------------------------------------------------------------
# PPM forward (NCHW in / NCHW out, matching the PyTorch module)
# ----------------------------------------------------------------------------
def ppm_forward(x_nchw, params, *, compute_dtype=jnp.bfloat16, eps=1e-5,
                out_dtype=None, hw_tile_pool=None, hw_tile_up=None):
    """params: list of (bin, conv_w [C, R], gamma [R], beta [R]).

    BatchNorm uses training-mode batch statistics (biased variance).
    # TODO(synk): eval-mode BN (running stats) would take precomputed
    # scale/shift instead of deriving them from the batch.
    """
    N, C, H, W = x_nchw.shape
    HW = H * W
    bins = [p[0] for p in params]
    nbins = len(bins)
    R = params[0][1].shape[1]
    RT = nbins * R
    out_dtype = out_dtype or x_nchw.dtype

    bbs = [b * b for b in bins]
    offs = np.concatenate([[0], np.cumsum(bbs)]).astype(int)
    BB = int(offs[-1])
    layout = tuple((int(offs[i]), int(bbs[i])) for i in range(nbins))

    # ---- static pooling / bilinear matrices, padded to a lane-aligned HW ----
    HW_pad = -(-HW // 128) * 128
    m_pool = np.concatenate([_adaptive_pool_matrix(H, W, b) for b in bins], 0)
    m_up = np.concatenate([_bilinear_up_matrix_T(H, W, b) for b in bins], 0)
    if HW_pad != HW:
        pad = ((0, 0), (0, HW_pad - HW))
        m_pool = np.pad(m_pool, pad)   # zero cols: padded x never contributes
        m_up = np.pad(m_up, pad)       # zero cols: padded outputs sliced off
    m_poolT = jnp.asarray(np.ascontiguousarray(m_pool.T), dtype=compute_dtype)
    m_upT = jnp.asarray(m_up, dtype=compute_dtype)                   # [BB, HWp]

    # x streamed in its NATIVE dtype; NCHW -> [N, C, HW] is a free reshape.
    x_flat = x_nchw.reshape(N, C, HW)
    if HW_pad != HW:
        # TODO(synk): pad/slice adds one HBM pass each; only taken when H*W is
        # not a multiple of 128 (e.g. PSPNet 60x60 -> 3600).
        x_flat = jnp.pad(x_flat, ((0, 0), (0, 0), (0, HW_pad - HW)))

    x_bytes = jnp.dtype(x_nchw.dtype).itemsize
    o_bytes = jnp.dtype(out_dtype).itemsize
    c_bytes = jnp.dtype(compute_dtype).itemsize
    vmem_limit = _vmem_limit_bytes()
    budget = int(vmem_limit * 0.6)

    # --- Phase 1: pooling (all bins) -> pooledT [N, n_split, C, BB] ----------
    if hw_tile_pool is None:
        per_col = 2 * (C * x_bytes + BB * c_bytes)        # double-buffered
        hw_tile_pool = _pick_hw_tile(HW_pad, per_col, budget - 2 * C * BB * 4)
    assert HW_pad % hw_tile_pool == 0
    n_tiles = HW_pad // hw_tile_pool
    # Split the HW reduction into two parallel partial sums so both v7x
    # TensorCores get work even when N == 1; combined by a tiny JAX sum.
    n_split = 2 if n_tiles % 2 == 0 else 1
    k_per = n_tiles // n_split

    def _x_idx(n, s, k):
        return (n, 0, s * k_per + k)

    def _mp_idx(n, s, k):
        return (s * k_per + k, 0)

    def _pooled_idx(n, s, k):
        return (n, s, 0, 0)

    pooled_parts = pl.pallas_call(
        functools.partial(_pool_kernel, compute_dtype=compute_dtype),
        out_shape=jax.ShapeDtypeStruct((N, n_split, C, BB), jnp.float32),
        grid=(N, n_split, k_per),
        in_specs=[
            pl.BlockSpec((None, C, hw_tile_pool), _x_idx),
            pl.BlockSpec((hw_tile_pool, BB), _mp_idx),
        ],
        out_specs=pl.BlockSpec((None, None, C, BB), _pooled_idx),
        compiler_params=pltpu.CompilerParams(
            dimension_semantics=("parallel", "parallel", "arbitrary"),
            vmem_limit_bytes=vmem_limit),
    )(x_flat, m_poolT)

    # --- Tiny plain-JAX glue: 1x1 convs + BatchNorm (batch stats) + ReLU -----
    # Hoisted out of the kernels: O(N*C*BB) work on a few-hundred-KB tensor,
    # negligible HBM traffic, and it removes the conv weight / BN statistics
    # from the streaming kernels entirely.
    pooledT = pooled_parts.sum(axis=1)                      # [N, C, BB] f32
    y = jnp.zeros((N, RT, BB), jnp.float32)                 # block-diagonal
    for bi, (_, wc, gamma, beta) in enumerate(params):
        off, bb = layout[bi]
        w_b = wc.astype(compute_dtype).astype(jnp.float32)  # [C, R]
        f_b = jnp.einsum('ncb,cr->nrb', pooledT[:, :, off:off + bb], w_b)
        mean = jnp.mean(f_b, axis=(0, 2), keepdims=True)    # [1, R, 1]
        var = jnp.maximum(
            jnp.mean(f_b * f_b, axis=(0, 2), keepdims=True) - mean * mean, 0.0)
        scale = gamma.reshape(1, R, 1).astype(jnp.float32) * jax.lax.rsqrt(var + eps)
        shift = beta.reshape(1, R, 1).astype(jnp.float32) - mean * scale
        y_b = jnp.maximum(f_b * scale + shift, 0.0)         # [N, R, bb]
        y = y.at[:, bi * R:(bi + 1) * R, off:off + bb].set(y_b)
    y = y.astype(compute_dtype)                             # [N, RT, BB] bf16

    # --- Phase 2: bilinear upsample (one block-diag matmul) + in-kernel concat
    if hw_tile_up is None:
        per_col = 2 * (C * x_bytes + BB * c_bytes + (C + RT) * o_bytes)
        hw_tile_up = _pick_hw_tile(HW_pad, per_col,
                                   budget - 2 * RT * BB * c_bytes)
    assert HW_pad % hw_tile_up == 0

    out = pl.pallas_call(
        functools.partial(_concat_up_kernel, c=C),
        out_shape=jax.ShapeDtypeStruct((N, C + RT, HW_pad), out_dtype),
        grid=(N, HW_pad // hw_tile_up),
        in_specs=[
            pl.BlockSpec((None, C, hw_tile_up), lambda n, j: (n, 0, j)),
            pl.BlockSpec((None, RT, BB), lambda n, j: (n, 0, 0)),
            pl.BlockSpec((BB, hw_tile_up), lambda n, j: (0, j)),
        ],
        out_specs=pl.BlockSpec((None, C + RT, hw_tile_up),
                               lambda n, j: (n, 0, j)),
        compiler_params=pltpu.CompilerParams(
            dimension_semantics=("parallel", "parallel"),
            vmem_limit_bytes=vmem_limit),
    )(x_flat, y, m_upT)

    if HW_pad != HW:
        out = out[:, :, :HW]
    # Lane-dense [N, C+RT, HW] reshapes directly into NCHW; no concat pass.
    return out.reshape(N, C + RT, H, W)


# ----------------------------------------------------------------------------
# Pure-JAX reference with matched bf16 rounding (sanity check only).
# ----------------------------------------------------------------------------
def _ppm_ref(x_nchw, params, compute_dtype, eps=1e-5):
    N, C, H, W = x_nchw.shape
    HW = H * W
    rnd = lambda a: jnp.asarray(a, dtype=compute_dtype).astype(jnp.float32)
    xl = rnd(x_nchw.reshape(N, C, HW))
    outs = [x_nchw]
    for (b, wc, gamma, beta) in params:
        m_pool = rnd(_adaptive_pool_matrix(H, W, b))      # [b*b, HW]
        m_upT = rnd(_bilinear_up_matrix_T(H, W, b))       # [b*b, HW]
        pooled = jnp.einsum('nch,ph->npc', xl, m_pool)
        feat = jnp.einsum('npc,cr->npr', pooled, rnd(wc))
        mean = jnp.mean(feat, axis=(0, 1), keepdims=True)
        var = jnp.maximum(
            jnp.mean(feat * feat, axis=(0, 1), keepdims=True) - mean * mean, 0.0)
        y = (feat - mean) * jax.lax.rsqrt(var + eps) * gamma.reshape(1, 1, -1)
        y = jnp.maximum(y + beta.reshape(1, 1, -1), 0.0)
        upb = jnp.einsum('npr,ph->nrh', rnd(y), m_upT)    # [N, R, HW]
        outs.append(upb.reshape(N, -1, H, W))
    return jnp.concatenate(outs, axis=1)


if __name__ == "__main__":
    key = jax.random.PRNGKey(0)
    N, C, H, W = 2, 8, 16, 16          # small NCHW input
    R = 4                              # reduction_dim
    bins = (1, 2, 3, 6)

    keys = jax.random.split(key, 1 + 3 * len(bins))
    x = jax.random.normal(keys[0], (N, C, H, W), dtype=jnp.float32)

    params = []
    for i, b in enumerate(bins):
        kw, kg, kb = keys[1 + 3 * i: 4 + 3 * i]
        wc = 0.1 * jax.random.normal(kw, (C, R), dtype=jnp.float32)   # [C_in, C_out]
        gamma = 1.0 + 0.1 * jax.random.normal(kg, (R,), dtype=jnp.float32)
        beta = 0.1 * jax.random.normal(kb, (R,), dtype=jnp.float32)
        params.append((b, wc, gamma, beta))

    # Use 128-wide HW tiles so the multi-step reduction / split-reduction /
    # pipelined-grid paths are all exercised even at this tiny demo size.
    out = jax.block_until_ready(
        ppm_forward(x, params, hw_tile_pool=128, hw_tile_up=128))
    assert out.shape == (N, C + len(bins) * R, H, W), out.shape

    # Also exercise the auto tile / auto VMEM-budget path once.
    out_auto = jax.block_until_ready(ppm_forward(x, params))
    assert out_auto.shape == out.shape

    ref = jax.block_until_ready(_ppm_ref(x, params, jnp.bfloat16))
    np.testing.assert_allclose(np.asarray(out), np.asarray(ref),
                               rtol=1e-2, atol=1e-2)
    np.testing.assert_allclose(np.asarray(out_auto), np.asarray(ref),
                               rtol=1e-2, atol=1e-2)

    print("KERNEL_OK")
</pallas_src>

<mosaic_0001>
module attributes {stable_mosaic.version = 11 : i64} {
  func.func @_pool_kernel(%arg0: i32, %arg1: i32, %arg2: i32, %arg3: memref<1x8x128xf32, #tpu.memory_space<vmem>>, %arg4: memref<128x50xbf16, #tpu.memory_space<vmem>>, %arg5: memref<1x1x8x50xf32, #tpu.memory_space<vmem>>) attributes {dimension_semantics = [#tpu.dimension_semantics<parallel>, #tpu.dimension_semantics<parallel>, #tpu.dimension_semantics<arbitrary>], iteration_bounds = array<i64: 2, 2, 1>, scalar_prefetch = 0 : i64, scratch_operands = 0 : i64, tpu.core_type = #tpu.core_type<tc>, window_params = [{transform_indices = @transform_0, window_bounds = array<i64: 1, 8, 128>}, {transform_indices = @transform_1, window_bounds = array<i64: 128, 50>}, {transform_indices = @transform_2, window_bounds = array<i64: 1, 1, 8, 50>}]} {
    %c0_i32 = arith.constant 0 : i32
    %0 = arith.cmpi eq, %arg2, %c0_i32 : i32
    %1 = arith.extui %0 : i1 to i32
    %c0_i32_0 = arith.constant 0 : i32
    %2 = arith.cmpi ne, %1, %c0_i32_0 : i32
    scf.if %2 {
      %cst_13 = arith.constant 0.000000e+00 : f32
      %14 = vector.broadcast %cst_13 : f32 to vector<8x50xf32>
      %c0_14 = arith.constant 0 : index
      %c0_15 = arith.constant 0 : index
      %c0_16 = arith.constant 0 : index
      %c0_17 = arith.constant 0 : index
      %15 = vector.load %arg5[%c0_14, %c0_15, %c0_16, %c0_17] : memref<1x1x8x50xf32, #tpu.memory_space<vmem>>, vector<1x1x8x50xf32>
      %16 = vector.shape_cast %15 : vector<1x1x8x50xf32> to vector<8x50xf32>
      %17 = vector.shape_cast %14 : vector<8x50xf32> to vector<1x1x8x50xf32>
      tpu.vector_store %arg5[%c0_14, %c0_15, %c0_16, %c0_17], %17 {strides = array<i32>} : memref<1x1x8x50xf32, #tpu.memory_space<vmem>>, vector<1x1x8x50xf32>,
    } else {
    }
    %c0 = arith.constant 0 : index
    %c0_1 = arith.constant 0 : index
    %c0_2 = arith.constant 0 : index
    %c0_3 = arith.constant 0 : index
    %3 = vector.load %arg5[%c0, %c0_1, %c0_2, %c0_3] : memref<1x1x8x50xf32, #tpu.memory_space<vmem>>, vector<1x1x8x50xf32>
    %4 = vector.shape_cast %3 : vector<1x1x8x50xf32> to vector<8x50xf32>
    %c0_4 = arith.constant 0 : index
    %c0_5 = arith.constant 0 : index
    %c0_6 = arith.constant 0 : index
    %5 = vector.load %arg3[%c0_4, %c0_5, %c0_6] : memref<1x8x128xf32, #tpu.memory_space<vmem>>, vector<1x8x128xf32>
    %6 = vector.shape_cast %5 : vector<1x8x128xf32> to vector<8x128xf32>
    %7 = arith.truncf %6 : vector<8x128xf32> to vector<8x128xbf16>
    %c0_7 = arith.constant 0 : index
    %c0_8 = arith.constant 0 : index
    %8 = vector.load %arg4[%c0_7, %c0_8] : memref<128x50xbf16, #tpu.memory_space<vmem>>, vector<128x50xbf16>
    %cst = arith.constant dense<0.000000e+00> : vector<8x50xf32>
    %9 = tpu.matmul %7, %8, %cst {dimension_numbers = #tpu.dot_dimension_numbers<[1], [0], [0], [1], [0, 0, 1, 1], [], []>} : vector<8x128xbf16>, vector<128x50xbf16>, vector<8x50xf32> -> vector<8x50xf32>
    %10 = arith.addf %4, %9 : vector<8x50xf32>
    %c0_9 = arith.constant 0 : index
    %c0_10 = arith.constant 0 : index
    %c0_11 = arith.constant 0 : index
    %c0_12 = arith.constant 0 : index
    %11 = vector.load %arg5[%c0_9, %c0_10, %c0_11, %c0_12] : memref<1x1x8x50xf32, #tpu.memory_space<vmem>>, vector<1x1x8x50xf32>
    %12 = vector.shape_cast %11 : vector<1x1x8x50xf32> to vector<8x50xf32>
    %13 = vector.shape_cast %10 : vector<8x50xf32> to vector<1x1x8x50xf32>
    tpu.vector_store %arg5[%c0_9, %c0_10, %c0_11, %c0_12], %13 {strides = array<i32>} : memref<1x1x8x50xf32, #tpu.memory_space<vmem>>, vector<1x1x8x50xf32>,
    return
  }
  func.func @transform_0(%arg0: i32, %arg1: i32, %arg2: i32) -> (i32, i32, i32) {
    %c1_i32 = arith.constant 1 : i32
    %0 = arith.muli %arg1, %c1_i32 : i32
    %1 = arith.addi %0, %arg2 : i32
    %c0_i32 = arith.constant 0 : i32
    %c0_i32_0 = arith.constant 0 : i32
    return %arg0, %c0_i32, %1 : i32, i32, i32
  }
  func.func @transform_1(%arg0: i32, %arg1: i32, %arg2: i32) -> (i32, i32) {
    %c1_i32 = arith.constant 1 : i32
    %0 = arith.muli %arg1, %c1_i32 : i32
    %1 = arith.addi %0, %arg2 : i32
    %c0_i32 = arith.constant 0 : i32
    %c0_i32_0 = arith.constant 0 : i32
    return %1, %c0_i32 : i32, i32
  }
  func.func @transform_2(%arg0: i32, %arg1: i32, %arg2: i32) -> (i32, i32, i32, i32) {
    %c0_i32 = arith.constant 0 : i32
    %c0_i32_0 = arith.constant 0 : i32
    %c0_i32_1 = arith.constant 0 : i32
    return %arg0, %arg1, %c0_i32, %c0_i32_0 : i32, i32, i32, i32
  }
}

</mosaic_0001>

<bundles_post_ra>
// kernel: tpu_custom_call.1
= control target key start
LH: loop header
LB: loop body
LE: loop exit
PB: predicated region body
PF: predicated region fallthrough
CT: control target
= control target key end

     0   :  { %7 = vsyncpa [#allocation3], 0  ;;  %s846_s0 = inlined_call_operand.vmem [shape: f32[2,8,256], index: 0, kind: input, shape index: {}]   ;;  %s847_s1 = inlined_call_operand.vmem [shape: bf16[256,50], index: 1, kind: input, shape index: {}]   ;;  %s848_s2 = inlined_call_operand.hbm [shape: f32[2,2,8,50], index: 2, kind: output, shape index: {}]  }
   0x1   :  { %9 = vsyncpa [#allocation3 + $0x1], 0  ;;  %s683_s9 = smov 0   ;;  %s685_s10 = smov 0  }
   0x2   :  { %s687_s11 = smov 0   ;;  %s689_s12 = smov 0  }
   0x3   :  { %s691_s13 = smov 0   ;;  %s693_s14 = smov 0  }
   0x4   :  { %s695_s15 = smov 0   ;;  %s697_s16 = smov 0  }
   0x5 LB: > { %s436_s17 = sadd.s32 4294967295, %s663_s16   ;;  %s437_s18 = sadd.s32 4294967294, %s663_s16   ;;  %s663_s16 = sphi %s697_s16, %s15_s16   ;;  %s659_s15 = sphi %s695_s15, %s857_s15   ;;  %s655_s14 = sphi %s693_s14, %s856_s14   ;;  %s651_s13 = sphi %s691_s13, %s855_s13   ;;  %s647_s12 = sphi %s689_s12, %s854_s12   ;;  %s643_s11 = sphi %s687_s11, %s853_s11   ;;  %s639_s10 = sphi %s685_s10, %s852_s10   ;;  %s635_s9 = sphi %s683_s9, %s851_s9  }
   0x6   : > { %s30_s19 = sadd.s32 1, %s655_s14  ;;  %s34_s20 = sadd.s32 1, %s659_s15 }
   0x7   : > { %p32_p0 = scmp.ge.s32.totalorder %s30_s19, 2  ;;  %p111_p1 = scmp.ne.s32.totalorder %s643_s11, %s639_s10 }
   0x8   : > { %p112_p2 = scmp.eq.s32.totalorder %s436_s17, 3  ;;  %p117_p5 = scmp.ne.s32.totalorder %s639_s10, %s635_s9 }
   0x9   : > { %s859_s19 = smov (%p32_p0, %s30_s19), 0  ;;  %s861_s20 = smov (!%p32_p0, %s34_s20), %s659_s15 }
   0xa   : > { %s97_s21 = ssub.s32 %s655_s14, %s859_s19  ;;  %p734_p3 = por %p112_p2, %p111_p1 }
   0xb   : > { %p36_p4 = scmp.ge.s32.totalorder %s861_s20, 2  ;;  %p118_p6 = scmp.eq.s32.totalorder %s437_s18, 3 }
   0xc   : > { %p440_p7 = scmp.ge.s32.totalorder %s663_s16, 1  ;;  %p160_p9 = scmp.lt.s32.totalorder %s663_s16, 5 }
   0xd   : > { %s863_s20 = smov (%p36_p4, %s861_s20), 0  ;;  %p743_p8 = por %p118_p6, %p117_p5 }
   0xe   : > { %s96_s24 = ssub.s32 %s659_s15, %s863_s20  ;;  %s101_s25 = sadd.s32 1, %s643_s11 }
   0xf   : > { %s98_s26 = sor.u32 %s97_s21, %s96_s24  ;;  %p161_p10 = pnand %p440_p7, %p160_p9 }
  0x10   : > { %p99_p11 = scmp.eq.s32.totalorder %s98_s26, 0  ;;  %s444_s28 = sshll.u32 (!%p161_p10), %s647_s12, 4  ;;  %v665_v0 = vmov (!%p161_p10), 0.0   ;;  %vm666_vm0 = vmmov (!%p161_p10), 0   ;;  %vm215_vm1 = vcmask (!%p161_p10), 408576  }
  0x11   : > { %164 = sbr.rel (%p161_p10) target bundleno = 287 (0x11f), region = 28  ;;  %468 = vmatprep.subr.bf16.mxu0 (!%p161_p10), %v665_v0  ;;  %p204_p12 = scmp.lt.s32.totalorder (!%p161_p10), %s444_s28, 31  ;;  %484 = vmatprep.mubr.msk.bf16.mxu0 (!%p161_p10), %vm666_vm0, %v665_v0 }
  0x12   : > { %s752_s27 = scalar_select %p99_p11, %s643_s11, %s101_s25  }
  0x13   : > { %s189_s5 = sand.u32 (!%p161_p10), 1, %s639_s10   ;;  %p193_p13 = scmp.lt.s32.totalorder (!%p161_p10), %s651_s13, 1 }
  0x14   : > { %s441_s6 = sshll.u32 (!%p161_p10), %s189_s5, 3  ;;  %p195_p0 = scmp.lt.s32.totalorder (!%p161_p10), %s647_s12, 1 }
  0x15   : > { %s765_s7 = scalar_lea.vmem (!%p161_p10), [#allocation2], %s441_s6 }
  0x16   : > { %216 = vst.msk [vmem:[%s765_s7] sm:$0xff] (!%p161_p10), %vm215_vm1, %v665_v0  ;;  %s343_s6 = sshll.u32 (!%p161_p10), %s765_s7, 4  ;;  %s791_s6 = int_to_ptr.vmem [resolvable:$true] %s343_s6 }
  0x18   : > { %s865_s28 = smov (!%p204_p12, %s444_s28), 31 }
  0x19   : > { %s445_s29 = sshll.u32 %s865_s28, 2 }
  0x1a   : > { %s758_s4 = scalar_lea.vmem %s847_s1, %s445_s29  ;;  %s455_s29 = sshll.u32 %s651_s13, 1 }
  0x1b   : > { %v561_v1 = vld [vmem:[%s758_s4] sm:$0xff]   ;;  %v562_v2 = vld [vmem:[%s758_s4 + $0x8] sm:$0xff]   ;;  %v563_v3 = vld [vmem:[%s758_s4 + $0x10] sm:$0xff]   ;;  %s194_s8 = scalar_select %p193_p13, %s651_s13, 1 }
  0x1c   : > { %469 = vmatpush3.bf16.msra.mxu0 %v561_v1  ;;  %v564_v4 = vld [vmem:[%s758_s4 + $0x18] sm:$0xff]   ;;  %s196_s17 = scalar_select %p195_p0, %s647_s12, 1  ;;  %v565_v5 = vld [vmem:[%s758_s4 + $0x20] sm:$0xff]   ;;  %v566_v6 = vld [vmem:[%s758_s4 + $0x28] sm:$0xff]  }
  0x1d   : > { %470 = vmatprep.subr.bf16.mxu0 %v665_v0  ;;  %s442_s18 = sshll.u32 %s194_s8, 1  ;;  %v567_v7 = vld [vmem:[%s758_s4 + $0x30] sm:$0xff]   ;;  %v568_v8 = vld [vmem:[%s758_s4 + $0x38] sm:$0xff]   ;;  %s339_s30 = sadd.s32 %s647_s12, %s455_s29  ;;  %v217_v11 = vld [vmem:[%s765_s7] sm:$0xff] }
  0x1e   : > { %s198_s21 = sadd.s32 %s442_s18, %s196_s17  ;;  %s456_s3 = sshll.u32 %s339_s30, 7 }
  0x1f   : > { %s443_s24 = sshll.u32 %s198_s21, 3  ;;  %s789_s4 = scalar_lea.hbm %s848_s2, %s456_s3 }
  0x20   : > { %471 = vmatpush3.bf16.msra.mxu0 %v562_v2  ;;  %s200_s28 = scalar_lea.vmem %s846_s0, %s443_s24  ;;  %s328_s12 = scalar_lea.sflag [#allocation3], %s189_s5 }
  0x21   : > { %472 = vmatprep.subr.bf16.mxu0 %v665_v0  ;;  %v218_v9 = vld [vmem:[%s200_s28] sm:$0xff]  ;;  %s569_s13 = scalar_lea.vmem %s791_s6, 128  ;;  %s667_s18 = smov [#allocation2]  }
  0x22   : > { %v219_v10 = vpack.c.bf16 %v218_v9, %v218_v9  ;;  %p570_p1 = scmp.ne.s32.totalorder %s791_s6, %s569_s13  ;;  %s573_s21 = sshll.u32 %s667_s18, 4  ;;  %s574_s21 = int_to_ptr.vmem [resolvable:$false] %s573_s21 }
  0x23   : > { %s575_s24 = scalar_lea.vmem %s574_s21, 256  ;;  %p576_p5 = scmp.lt.s32.totalorder %s791_s6, %s574_s21 }
  0x24   : > { %473 = vmatpush3.bf16.msra.mxu0 %v563_v3  ;;  %p571_p2 = pnand %p570_p1, %p734_p3  ;;  %p577_p6 = scmp.lt.s32.totalorder %s575_s24, %s569_s13 }
  0x25   : > { %474 = vmatprep.subr.bf16.mxu0 %v665_v0 }
  0x26   : > { %p572_p4 = pneg %p571_p2  ;;  %p578_p7 = por %p577_p6, %p576_p5 }
  0x28   : > { %475 = vmatpush3.bf16.msra.mxu0 %v564_v4  ;;  %p579_p9 = pnand %p578_p7, %p572_p4 }
  0x29   : > { %476 = vmatprep.subr.bf16.mxu0 %v665_v0 }
  0x2c   : > { %477 = vmatpush3.bf16.msra.mxu0 %v565_v5 }
  0x2d   : > { %478 = vmatprep.subr.bf16.mxu0 %v665_v0 }
  0x30   : > { %479 = vmatpush3.bf16.msra.mxu0 %v566_v6 }
  0x31   : > { %480 = vmatprep.subr.bf16.mxu0 %v665_v0 }
  0x34   : > { %481 = vmatpush3.bf16.msra.mxu0 %v567_v7 }
  0x35   : > { %482 = vmatprep.subr.bf16.mxu0 %v665_v0 }
  0x38   : > { %483 = vmatpush3.bf16.msra.mxu0 %v568_v8 }
  0x3b   : > { %485 = vmatmul.mubr.bf16.vlgmr.msra.gmra.mrb[0].mxu0 %v219_v10 }
 0x10e   : > { %v318_v12 = vpop.f32.mrb[0].mxu0 }
 0x10f   : > { %v324_v13 = vadd.f32 %v318_v12, %v217_v11  ;;  %v486_v14 = vpop.f32.mrb[1].mxu0 }
 0x110   : > { %v321_v15 = vpop.f32.mrb[2].mxu0 }
 0x111   : > { %326 = vst.msk [vmem:[%s765_s7] sm:$0xff] %vm215_vm1, %v324_v13  ;;  %v487_v16 = vpop.f32.mrb[3].mxu0 }
 0x112   : > { %582 = shalt.err (!%p579_p9)
}
 0x113   : > { %s583_s5 = scalar_lea.hbm %s789_s4, 128  ;;  %s587_s26 = scalar_lea.hbm %s848_s2, 512 }
 0x114   : > { %p584_p10 = scmp.ne.s32.totalorder %s789_s4, %s583_s5  ;;  %p588_p13 = scmp.lt.u32.totalorder %s789_s4, %s848_s2 }
 0x115   : > { %p589_p0 = scmp.lt.u32.totalorder %s587_s26, %s583_s5  ;;  %p591_p2 = scmp.lt.u32.totalorder %s583_s5, %s789_s4 }
 0x116   : > { %p585_p11 = pnand %p584_p10, %p734_p3 }
 0x117   : > { %p590_p1 = por %p589_p0, %p588_p13 }
 0x118   : > { %p586_p12 = pneg %p585_p11 }
 0x119   : > { %p592_p4 = por %p591_p2, %p590_p1 }
 0x11b   : > { %p593_p5 = pnand %p592_p4, %p586_p12 }
 0x11d   : > { %596 = shalt.err (!%p593_p5)
}
 0x11e   : > { %488 = dma.vmem_to_hbm [thread:$0]  (%p734_p3), %s791_s6, 128, %s789_s4, %s328_s12  }
 0x11f PF: > { %p494_p6 = scmp.ge.s32.totalorder %s663_s16, 2  ;;  %s355_s30 = sand.u32 1, %s635_s9  }
 0x120   : > { %s356_s3 = scalar_lea.sflag [#allocation3], %s355_s30 }
 0x121   : > { %p491_p7 = pnand %p494_p6, %p743_p8 }
 0x123   : > { %630 = dma.done.wait (!%p491_p7), %s356_s3, 128  }
 0x124   : > { %632 = vsyncadd (!%p491_p7), %s356_s3, 4294967168  ;;  %s15_s16 = sadd.s32 1, %s663_s16   ;;  %s851_s9 = smov %s639_s10 }
 0x125   : > { %p12_p9 = scmp.ge.s32.totalorder %s15_s16, 6   ;;  %s852_s10 = smov %s643_s11 }
 0x126   : > { %s853_s11 = smov %s752_s27  ;;  %s854_s12 = smov %s655_s14 }
 0x127   : > { %s855_s13 = smov %s659_s15  ;;  %s856_s14 = smov %s859_s19 }
 0x128   : > { %s857_s15 = smov %s863_s20  ;;  %14 = sbr.rel (!%p12_p9) target bundleno = 5 (0x5), region = 70 }
 0x12f   :  { %361 = vsyncpa [#allocation3], 1 }
 0x130   :  { %363 = vsyncpa [#allocation3 + $0x1], 1 }

</bundles_post_ra>
